<compile_context>
chip_gen: v5e
topology: v5e:2x2
jax: 0.10.0
libtpu: 0.0.40
codegen_flags: <defaults>
</compile_context>

<pallas_src>
import functools

import jax
import jax.numpy as jnp
from jax import lax
from jax.experimental import pallas as pl
from jax.experimental.pallas import tpu as pltpu


def _round_up(x: int, m: int) -> int:
    return ((x + m - 1) // m) * m


def _sum_all(x):
    """Full reduction of a rank-2 array, kept rank-2 as a (1, 1) result."""
    return jnp.sum(jnp.sum(x, axis=1, keepdims=True), axis=0, keepdims=True)


def _make_kernel(n, tm, tn, ragged_rows, ragged_cols, resident_cols):
    """Build the kernel body, specializing on static tiling facts."""

    def kernel(adj_ref, zr_ref, zct_ref, out_ref):
        i = pl.program_id(0)
        j = pl.program_id(1)

        @pl.when(j == 0)
        def _():
            out_ref[...] = jnp.zeros_like(out_ref)

        adj = adj_ref[...]  # (tm, tn), native dtype, no cast

        # Mask garbage in ragged edge tiles (only emitted when N % tile != 0).
        mask = None
        if ragged_rows:
            rows = i * tm + lax.broadcasted_iota(jnp.int32, (tm, tn), 0)
            mask = rows < n
        if ragged_cols:
            cols = j * tn + lax.broadcasted_iota(jnp.int32, (tm, tn), 1)
            cmask = cols < n
            mask = cmask if mask is None else jnp.logical_and(mask, cmask)
        if mask is not None:
            adj = jnp.where(mask, adj, jnp.zeros((), adj.dtype))

        # Augmented column block for this j tile:
        #   resident: whole (nj, Da, tn) slab lives in VMEM, pick slice j.
        #   streamed: (1, Da, tn) tile DMA'd per step, pick slice 0.
        zct = zct_ref[j] if resident_cols else zct_ref[0]   # (Da, tn)
        zr = zr_ref[...]                                    # (tm, Da), f32

        # Single MXU matmul: contract the column-tile axis (K = tn).
        p = lax.dot_general(
            adj, zct,
            dimension_numbers=(((1,), (1,)), ((), ())),
            preferred_element_type=jnp.float32,
        )                                                   # (tm, Da), f32

        # Partial loss for this (i, j) tile; broadcast (1,1) -> (8,128) block.
        out_ref[...] += _sum_all(p * zr)

    return kernel


def loss_local(adj: jax.Array, z: jax.Array, *, tm: int = 256, tn: int = 2048,
               max_resident_zct_bytes: int = 4 * 1024 * 1024) -> jax.Array:
    """Pallas implementation of LossLocal.forward(adj, z). Returns a scalar.

    adj may be f32 or bf16 (consumed natively by the MXU; bf16 halves the
    dominant N^2 HBM traffic and is exact for 0/1 adjacency).
    """
    N, D = z.shape
    assert adj.shape == (N, N)

    # TODO(synk): int8/fp8 adjacency fast path (v5e/v6e int MXU, v7x fp8) not
    # implemented; such dtypes fall back to a one-time f32 cast here.
    if adj.dtype == jnp.float32 or adj.dtype == jnp.bfloat16:
        cdt = adj.dtype
    else:
        adj = adj.astype(jnp.float32)
        cdt = jnp.float32
    itemsize = jnp.zeros((), cdt).dtype.itemsize

    # Augmented embeddings folding the norm terms into the matmul.
    zf = z.astype(jnp.float32)
    zn = jnp.sum(zf * zf, axis=1, keepdims=True)            # (N, 1)
    ones = jnp.ones((N, 1), jnp.float32)
    Da = _round_up(D + 2, 8)                                # zero-pad feature axis
    fpad = jnp.zeros((N, Da - (D + 2)), jnp.float32)
    zr_aug = jnp.concatenate([zf, zn, ones, fpad], axis=1)          # (N, Da) f32
    zc_aug = jnp.concatenate([-2.0 * zf, ones, zn, fpad], axis=1)   # (N, Da)

    # Clamp tile sizes for small problems (keeps layout-friendly multiples).
    tm = min(tm, _round_up(N, 16))
    tn = min(tn, _round_up(N, 128))
    assert tm % 8 == 0 and tn % 128 == 0
    ni = pl.cdiv(N, tm)
    nj = pl.cdiv(N, tn)
    Nr, Nc = ni * tm, nj * tn

    # Pad only the small O(N*D) operands so ragged z-side blocks hold zeros;
    # adj itself is never padded (no extra N^2 HBM pass).
    if Nr > N:
        zr_aug = jnp.pad(zr_aug, ((0, Nr - N), (0, 0)))
    if Nc > N:
        zc_aug = jnp.pad(zc_aug, ((0, Nc - N), (0, 0)))

    # Column-tile-major layout (nj, Da, tn): kernel indexes the leading axis.
    zct = zc_aug.astype(cdt).reshape(nj, tn, Da).transpose(0, 2, 1)  # (nj, Da, tn)

    resident = 2 * nj * Da * tn * itemsize <= max_resident_zct_bytes
    if resident:
        zct_spec = pl.BlockSpec((nj, Da, tn), lambda i, j: (0, 0, 0))
    else:
        zct_spec = pl.BlockSpec((1, Da, tn), lambda i, j: (j, 0, 0))

    kernel = _make_kernel(N, tm, tn, Nr > N, Nc > N, resident)

    out = pl.pallas_call(
        kernel,
        out_shape=jax.ShapeDtypeStruct((ni * 8, 128), jnp.float32),
        grid_spec=pltpu.PrefetchScalarGridSpec(
            num_scalar_prefetch=0,
            grid=(ni, nj),                                   # reduction axis innermost
            in_specs=[
                pl.BlockSpec((tm, tn), lambda i, j: (i, j)),  # adj tile, native dtype
                pl.BlockSpec((tm, Da), lambda i, j: (i, 0)),  # augmented rows (f32)
                zct_spec,                                     # augmented cols
            ],
            out_specs=pl.BlockSpec((8, 128), lambda i, j: (i, 0)),
        ),
        compiler_params=pltpu.CompilerParams(
            dimension_semantics=("parallel", "arbitrary"),
        ),
    )(adj, zr_aug, zct)

    # Each (8, 128) block holds that row tile's partial sum replicated across
    # the block; pick one element per tile and sum the per-tile partials.
    return jnp.sum(out.reshape(ni, 8, 128)[:, 0, 0])


def _loss_local_ref(adj, z):
    adj = adj.astype(jnp.float32)
    z = z.astype(jnp.float32)
    zn = jnp.sum(z * z, axis=1, keepdims=True)
    gram = jnp.dot(z, z.T, precision=lax.Precision.HIGHEST)
    return jnp.sum(adj * (zn - 2.0 * gram + zn.T))


if __name__ == "__main__":
    key = jax.random.PRNGKey(0)
    k_a1, k_z1, k_a2, k_z2 = jax.random.split(key, 4)

    def make_inputs(ka, kz, n, d):
        a = (jax.random.uniform(ka, (n, n)) < 0.1).astype(jnp.float32)
        a = jnp.triu(a, 1)
        a = a + a.T                       # symmetric 0/1 adjacency, no self-loops
        zz = jax.random.normal(kz, (n, d), dtype=jnp.float32)
        return a, zz

    # 1) small, tile-aligned, f32 adjacency (resident z-columns, no masking).
    adj1, z1 = make_inputs(k_a1, k_z1, 128, 32)
    loss1 = jax.block_until_ready(jax.jit(loss_local)(adj1, z1))
    ref1 = _loss_local_ref(adj1, z1)
    assert jnp.allclose(loss1, ref1, rtol=1e-3), (loss1, ref1)

    # 2) ragged N -> in-kernel edge masking, multi-tile grid, resident z-cols.
    adj2, z2 = make_inputs(k_a2, k_z2, 200, 32)
    f2 = jax.jit(functools.partial(loss_local, tm=64, tn=128))
    loss2 = jax.block_until_ready(f2(adj2, z2))
    ref2 = _loss_local_ref(adj2, z2)
    assert jnp.allclose(loss2, ref2, rtol=1e-3), (loss2, ref2)

    # 3) same problem, forcing the streamed (non-resident) z-column path.
    f3 = jax.jit(functools.partial(loss_local, tm=64, tn=128,
                                   max_resident_zct_bytes=0))
    loss3 = jax.block_until_ready(f3(adj2, z2))
    assert jnp.allclose(loss3, ref2, rtol=1e-3), (loss3, ref2)

    # 4) bf16 adjacency (halves N^2 HBM traffic; exact for 0/1 graphs).
    loss4 = jax.block_until_ready(jax.jit(loss_local)(adj1.astype(jnp.bfloat16), z1))
    assert jnp.allclose(loss4, ref1, rtol=2e-2), (loss4, ref1)

    print("KERNEL_OK")
</pallas_src>

<mosaic_0001>
module attributes {stable_mosaic.version = 11 : i64} {
  func.func @kernel(%arg0: i32, %arg1: i32, %arg2: memref<128x128xf32, #tpu.memory_space<vmem>>, %arg3: memref<128x40xf32, #tpu.memory_space<vmem>>, %arg4: memref<1x40x128xf32, #tpu.memory_space<vmem>>, %arg5: memref<8x128xf32, #tpu.memory_space<vmem>>) attributes {dimension_semantics = [#tpu.dimension_semantics<parallel>, #tpu.dimension_semantics<arbitrary>], iteration_bounds = array<i64: 1, 1>, scalar_prefetch = 0 : i64, scratch_operands = 0 : i64, tpu.core_type = #tpu.core_type<tc>, window_params = [{transform_indices = @transform_0, window_bounds = array<i64: 128, 128>}, {transform_indices = @transform_1, window_bounds = array<i64: 128, 40>}, {pipeline_mode = #tpu.pipeline_mode<synchronous>, transform_indices = @transform_2, window_bounds = array<i64: 1, 40, 128>}, {transform_indices = @transform_3, window_bounds = array<i64: 8, 128>}]} {
    %c0_i32 = arith.constant 0 : i32
    %0 = arith.cmpi eq, %arg1, %c0_i32 : i32
    %1 = arith.extui %0 : i1 to i32
    %c0_i32_0 = arith.constant 0 : i32
    %2 = arith.cmpi ne, %1, %c0_i32_0 : i32
    scf.if %2 {
      %cst_12 = arith.constant 0.000000e+00 : f32
      %18 = vector.broadcast %cst_12 : f32 to vector<8x128xf32>
      %c0_13 = arith.constant 0 : index
      %c0_14 = arith.constant 0 : index
      %19 = vector.load %arg5[%c0_13, %c0_14] : memref<8x128xf32, #tpu.memory_space<vmem>>, vector<8x128xf32>
      tpu.vector_store %arg5[%c0_13, %c0_14], %18 {strides = array<i32>} : memref<8x128xf32, #tpu.memory_space<vmem>>, vector<8x128xf32>,
    } else {
    }
    %c0 = arith.constant 0 : index
    %c0_1 = arith.constant 0 : index
    %3 = vector.load %arg2[%c0, %c0_1] : memref<128x128xf32, #tpu.memory_space<vmem>>, vector<128x128xf32>
    %4 = arith.index_cast %arg1 : i32 to index
    %c0_2 = arith.constant 0 : index
    %c0_3 = arith.constant 0 : index
    %5 = vector.load %arg4[%4, %c0_2, %c0_3] : memref<1x40x128xf32, #tpu.memory_space<vmem>>, vector<1x40x128xf32>
    %6 = vector.shape_cast %5 : vector<1x40x128xf32> to vector<40x128xf32>
    %c0_4 = arith.constant 0 : index
    %c0_5 = arith.constant 0 : index
    %7 = vector.load %arg3[%c0_4, %c0_5] : memref<128x40xf32, #tpu.memory_space<vmem>>, vector<128x40xf32>
    %cst = arith.constant dense<0.000000e+00> : vector<128x40xf32>
    %8 = tpu.matmul %3, %6, %cst {dimension_numbers = #tpu.dot_dimension_numbers<[1], [1], [0], [0], [0, 0, 1, 0], [], []>} : vector<128x128xf32>, vector<40x128xf32>, vector<128x40xf32> -> vector<128x40xf32>
    %c0_6 = arith.constant 0 : index
    %c0_7 = arith.constant 0 : index
    %9 = vector.load %arg5[%c0_6, %c0_7] : memref<8x128xf32, #tpu.memory_space<vmem>>, vector<8x128xf32>
    %10 = arith.mulf %8, %7 : vector<128x40xf32>
    %cst_8 = arith.constant dense<0.000000e+00> : vector<128xf32>
    %11 = vector.multi_reduction <add>, %10, %cst_8 [1] : vector<128x40xf32> to vector<128xf32>
    %12 = vector.shape_cast %11 : vector<128xf32> to vector<128x1xf32>
    %cst_9 = arith.constant dense<0.000000e+00> : vector<1xf32>
    %13 = vector.multi_reduction <add>, %12, %cst_9 [0] : vector<128x1xf32> to vector<1xf32>
    %14 = vector.shape_cast %13 : vector<1xf32> to vector<1x1xf32>
    %15 = vector.broadcast %14 : vector<1x1xf32> to vector<8x128xf32>
    %16 = arith.addf %9, %15 : vector<8x128xf32>
    %c0_10 = arith.constant 0 : index
    %c0_11 = arith.constant 0 : index
    %17 = vector.load %arg5[%c0_10, %c0_11] : memref<8x128xf32, #tpu.memory_space<vmem>>, vector<8x128xf32>
    tpu.vector_store %arg5[%c0_10, %c0_11], %16 {strides = array<i32>} : memref<8x128xf32, #tpu.memory_space<vmem>>, vector<8x128xf32>,
    return
  }
  func.func @transform_0(%arg0: i32, %arg1: i32) -> (i32, i32) {
    %c0_i32 = arith.constant 0 : i32
    return %arg0, %arg1 : i32, i32
  }
  func.func @transform_1(%arg0: i32, %arg1: i32) -> (i32, i32) {
    %c0_i32 = arith.constant 0 : i32
    %c0_i32_0 = arith.constant 0 : i32
    return %arg0, %c0_i32 : i32, i32
  }
  func.func @transform_2(%arg0: i32, %arg1: i32) -> (i32, i32, i32) {
    %c0_i32 = arith.constant 0 : i32
    %c0_i32_0 = arith.constant 0 : i32
    %c0_i32_1 = arith.constant 0 : i32
    %c0_i32_2 = arith.constant 0 : i32
    return %c0_i32, %c0_i32_0, %c0_i32_1 : i32, i32, i32
  }
  func.func @transform_3(%arg0: i32, %arg1: i32) -> (i32, i32) {
    %c0_i32 = arith.constant 0 : i32
    %c0_i32_0 = arith.constant 0 : i32
    return %arg0, %c0_i32 : i32, i32
  }
}

</mosaic_0001>

<bundles_post_ra>
// kernel: loss_local.1
= control target key start
LH: loop header
LB: loop body
LE: loop exit
PB: predicated region body
PF: predicated region fallthrough
CT: control target
= control target key end

     0   :  { %vm140_vm0 = vcmask 326656   ;;  %s382_s2 = inlined_call_operand.vmem [shape: f32[1,40,128], index: 2, kind: input, shape index: {}]   ;;  %s383_s0 = inlined_call_operand.vmem [shape: f32[128,128], index: 0, kind: input, shape index: {}]   ;;  %s384_s1 = inlined_call_operand.vmem [shape: f32[128,40], index: 1, kind: input, shape index: {}]   ;;  %s385_s3 = inlined_call_operand.vmem [shape: f32[8,128], index: 3, kind: output, shape index: {}]  }
   0x1   :  { %v41_v0 = vld [vmem:[%s382_s2 + $0x20] sm:$0xff]  ;;  %v40_v1 = vld [vmem:[%s382_s2 + $0x18] sm:$0xff]  ;;  %v39_v2 = vld [vmem:[%s382_s2 + $0x10] sm:$0xff] }
   0x2   :  { %69 = vmatpush.xpose.msra.mxu0 %v41_v0  ;;  %216 = vmatpush.xpose.msra.mxu1 %v41_v0  ;;  %v38_v3 = vld [vmem:[%s382_s2 + $0x8] sm:$0xff]  ;;  %v37_v4 = vld [vmem:[%s382_s2] sm:$0xff]  ;;  %v21_v13 = vld [vmem:[%s383_s0 + $0x10] sm:$0xff] }
   0x3   :  { %217 = vmatpush.xpose.msra.mxu2 %v41_v0  ;;  %218 = vmatpush.xpose.msra.mxu3 %v41_v0  ;;  %v19_v5 = vld [vmem:[%s383_s0] sm:$0xff]  ;;  %v20_v9 = vld [vmem:[%s383_s0 + $0x8] sm:$0xff]  ;;  %v25_v14 = vld [vmem:[%s383_s0 + $0x30] sm:$0xff] }
   0x4   :  { %v23_v6 = vld [vmem:[%s383_s0 + $0x20] sm:$0xff]  ;;  %v24_v10 = vld [vmem:[%s383_s0 + $0x28] sm:$0xff]  ;;  %v29_v15 = vld [vmem:[%s383_s0 + $0x50] sm:$0xff] }
   0x5   :  { %v27_v7 = vld [vmem:[%s383_s0 + $0x40] sm:$0xff]  ;;  %v28_v11 = vld [vmem:[%s383_s0 + $0x48] sm:$0xff]  ;;  %v33_v16 = vld [vmem:[%s383_s0 + $0x70] sm:$0xff] }
   0x6   :  { %70 = vmatpush.xpose.msra.mxu0 %v40_v1  ;;  %219 = vmatpush.xpose.msra.mxu1 %v40_v1  ;;  %v31_v8 = vld [vmem:[%s383_s0 + $0x60] sm:$0xff]  ;;  %v32_v12 = vld [vmem:[%s383_s0 + $0x68] sm:$0xff]  ;;  %v22_v17 = vld [vmem:[%s383_s0 + $0x18] sm:$0xff] }
   0x7   :  { %220 = vmatpush.xpose.msra.mxu2 %v40_v1  ;;  %221 = vmatpush.xpose.msra.mxu3 %v40_v1  ;;  %v26_v18 = vld [vmem:[%s383_s0 + $0x38] sm:$0xff]  ;;  %v42_v21 = vld [vmem:[%s384_s1] sm:$0xff]  ;;  %v43_v29 = vld [vmem:[%s384_s1 + $0x8] sm:$0xff] }
   0x8   :  { %v30_v19 = vld [vmem:[%s383_s0 + $0x58] sm:$0xff]  ;;  %v46_v22 = vld [vmem:[%s384_s1 + $0x20] sm:$0xff]  ;;  %v47_v30 = vld [vmem:[%s384_s1 + $0x28] sm:$0xff] }
   0x9   :  { %v34_v20 = vld [vmem:[%s383_s0 + $0x78] sm:$0xff]  ;;  %v50_v37 = vld [vmem:[%s384_s1 + $0x40] sm:$0xff]  ;;  %v44_v41 = vld [vmem:[%s384_s1 + $0x10] sm:$0xff] }
   0xa   :  { %71 = vmatpush.xpose.msra.mxu0 %v39_v2  ;;  %222 = vmatpush.xpose.msra.mxu1 %v39_v2  ;;  %v48_v42 = vld [vmem:[%s384_s1 + $0x30] sm:$0xff]  ;;  %v51_v49 = vld [vmem:[%s384_s1 + $0x48] sm:$0xff]  ;;  %v45_v54 = vld [vmem:[%s384_s1 + $0x18] sm:$0xff] }
   0xb   :  { %223 = vmatpush.xpose.msra.mxu2 %v39_v2  ;;  %224 = vmatpush.xpose.msra.mxu3 %v39_v2  ;;  %v49_v60 = vld [vmem:[%s384_s1 + $0x38] sm:$0xff]  ;;  %v54_v63 = vld [vmem:[%s384_s1 + $0x60] sm:$0xff] }
   0xc   :  { %v53_v1 = vld [vmem:[%s384_s1 + $0x58] sm:$0xff] }
   0xe   :  { %72 = vmatpush.xpose.msra.mxu0 %v38_v3  ;;  %225 = vmatpush.xpose.msra.mxu1 %v38_v3 }
   0xf   :  { %226 = vmatpush.xpose.msra.mxu2 %v38_v3  ;;  %227 = vmatpush.xpose.msra.mxu3 %v38_v3 }
  0x12   :  { %73 = vmatpush.xpose.msra.mxu0 %v37_v4  ;;  %228 = vmatpush.xpose.msra.mxu1 %v37_v4 }
  0x13   :  { %229 = vmatpush.xpose.msra.mxu2 %v37_v4  ;;  %230 = vmatpush.xpose.msra.mxu3 %v37_v4 }
  0x15   :  { %74 = vmatmul.f32.vlgmr.msra.gmra.mxu0 %v19_v5  ;;  %86 = vmatmul.f32.vlgmr.msra.gmra.mxu1 %v23_v6  ;;  %v56_v6 = vld [vmem:[%s384_s1 + $0x70] sm:$0xff] }
  0x16   :  { %98 = vmatmul.f32.vlgmr.msra.gmra.mxu2 %v27_v7  ;;  %110 = vmatmul.f32.vlgmr.msra.gmra.mxu3 %v31_v8  ;;  %v57_v8 = vld [vmem:[%s384_s1 + $0x78] sm:$0xff] }
  0x1d   :  { %77 = vmatmul.f32.gmra.mxu0 %v20_v9  ;;  %89 = vmatmul.f32.gmra.mxu1 %v24_v10 }
  0x1e   :  { %101 = vmatmul.f32.gmra.mxu2 %v28_v11  ;;  %113 = vmatmul.f32.gmra.mxu3 %v32_v12  ;;  %v52_v11 = vld [vmem:[%s384_s1 + $0x50] sm:$0xff] }
  0x25   :  { %80 = vmatmul.f32.gmra.mxu0 %v21_v13  ;;  %92 = vmatmul.f32.gmra.mxu1 %v25_v14 }
  0x26   :  { %104 = vmatmul.f32.gmra.mxu2 %v29_v15  ;;  %116 = vmatmul.f32.gmra.mxu3 %v33_v16 }
  0x2d   :  { %83 = vmatmul.f32.gmra.mxu0 %v22_v17  ;;  %95 = vmatmul.f32.gmra.mxu1 %v26_v18  ;;  %v55_v18 = vld [vmem:[%s384_s1 + $0x68] sm:$0xff] }
  0x2e   :  { %107 = vmatmul.f32.gmra.mxu2 %v30_v19  ;;  %119 = vmatmul.f32.gmra.mxu3 %v34_v20 }
  0x92   :  { %v75_v23 = vpop.f32.mrf.mxu0  ;;  %v87_v24 = vpop.f32.mrf.mxu1 }
  0x93   :  { %v124_v25 = vmul.f32 %v75_v23, %v42_v21  ;;  %v128_v26 = vmul.f32 %v87_v24, %v46_v22 }
  0x95   :  { %v141_v27 = vsel %vm140_vm0, %v124_v25, 0.0  ;;  %v153_v28 = vsel %vm140_vm0, %v128_v26, 0.0 }
  0x96   :  { %142 = vadd.xlane.f32.xlu0 %v141_v27  ;;  %154 = vadd.xlane.f32.xlu2 %v153_v28 }
  0x99   :  { %v99_v31 = vpop.f32.mrf.mxu2  ;;  %v111_v32 = vpop.f32.mrf.mxu3 }
  0x9a   :  { %v78_v33 = vpop.f32.mrf.mxu0  ;;  %v90_v34 = vpop.f32.mrf.mxu1  ;;  %v132_v40 = vmul.f32 %v99_v31, %v50_v37  ;;  %v136_v2 = vmul.f32 %v111_v32, %v54_v63 }
  0x9b   :  { %v125_v35 = vmul.f32 %v78_v33, %v43_v29  ;;  %v129_v36 = vmul.f32 %v90_v34, %v47_v30 }
  0x9c   :  { %v165_v50 = vsel %vm140_vm0, %v132_v40, 0.0  ;;  %v177_v10 = vsel %vm140_vm0, %v136_v2, 0.0 }
  0x9d   :  { %v144_v38 = vsel %vm140_vm0, %v125_v35, 0.0  ;;  %v156_v39 = vsel %vm140_vm0, %v129_v36, 0.0 }
  0x9e   :  { %145 = vadd.xlane.f32.xlu0 %v144_v38  ;;  %157 = vadd.xlane.f32.xlu2 %v156_v39 }
  0xa1   :  { %v102_v43 = vpop.f32.mrf.mxu2  ;;  %v114_v44 = vpop.f32.mrf.mxu3 }
  0xa2   :  { %v81_v45 = vpop.f32.mrf.mxu0  ;;  %v93_v46 = vpop.f32.mrf.mxu1  ;;  %v133_v53 = vmul.f32 %v102_v43, %v51_v49  ;;  %v137_v19 = vmul.f32 %v114_v44, %v55_v18 }
  0xa3   :  { %v126_v47 = vmul.f32 %v81_v45, %v44_v41  ;;  %v130_v48 = vmul.f32 %v93_v46, %v48_v42 }
  0xa4   :  { %v168_v59 = vsel %vm140_vm0, %v133_v53, 0.0  ;;  %v180_v20 = vsel %vm140_vm0, %v137_v19, 0.0 }
  0xa5   :  { %v159_v51 = vsel %vm140_vm0, %v130_v48, 0.0  ;;  %v147_v52 = vsel %vm140_vm0, %v126_v47, 0.0 }
  0xa6   :  { %160 = vadd.xlane.f32.xlu0 %v159_v51  ;;  %148 = vadd.xlane.f32.xlu1 %v147_v52 }
  0xa7   :  { %166 = vadd.xlane.f32.xlu2 %v165_v50 }
  0xa9   :  { %v105_v55 = vpop.f32.mrf.mxu2  ;;  %v117_v57 = vpop.f32.mrf.mxu3 }
  0xaa   :  { %v84_v56 = vpop.f32.mrf.mxu0  ;;  %v96_v61 = vpop.f32.mrf.mxu1  ;;  %v138_v12 = vmul.f32 %v117_v57, %v56_v6  ;;  %v134_v14 = vmul.f32 %v105_v55, %v52_v11 }
  0xab   :  { %v127_v58 = vmul.f32 %v84_v56, %v45_v54  ;;  %v131_v0 = vmul.f32 %v96_v61, %v49_v60 }
  0xac   :  { %v183_v15 = vsel %vm140_vm0, %v138_v12, 0.0  ;;  %v171_v17 = vsel %vm140_vm0, %v134_v14, 0.0 }
  0xad   :  { %v150_v62 = vsel %vm140_vm0, %v127_v58, 0.0  ;;  %v162_v5 = vsel %vm140_vm0, %v131_v0, 0.0 }
  0xae   :  { %169 = vadd.xlane.f32.xlu0 %v168_v59  ;;  %151 = vadd.xlane.f32.xlu1 %v150_v62 }
  0xb1   :  { %v108_v3 = vpop.f32.mrf.mxu2  ;;  %v120_v9 = vpop.f32.mrf.mxu3 }
  0xb2   :  { %v135_v4 = vmul.f32 %v108_v3, %v53_v1  ;;  %v139_v13 = vmul.f32 %v120_v9, %v57_v8 }
  0xb4   :  { %v174_v7 = vsel %vm140_vm0, %v135_v4, 0.0  ;;  %v186_v16 = vsel %vm140_vm0, %v139_v13, 0.0 }
  0xb5   :  { %175 = vadd.xlane.f32.xlu2 %v174_v7 }
  0xb6   :  { %178 = vadd.xlane.f32.xlu0 %v177_v10  ;;  %163 = vadd.xlane.f32.xlu1 %v162_v5 }
  0xbd   :  { %184 = vadd.xlane.f32.xlu2 %v183_v15 }
  0xbe   :  { %172 = vadd.xlane.f32.xlu1 %v171_v17  ;;  %187 = vadd.xlane.f32.xlu0 %v186_v16 }
  0xc6   :  { %181 = vadd.xlane.f32.xlu1 %v180_v20 }
 0x109   :  { %v143_v21 = vpop.xlane.xlu0 %142  ;;  %v155_v22 = vpop.xlane.xlu2 %154 }
 0x111   :  { %v146_v23 = vpop.xlane.xlu0 %145  ;;  %v158_v26 = vpop.xlane.xlu2 %157 }
 0x112   :  { %v189_v25 = vadd.f32 %v146_v23, %v143_v21 }
 0x119   :  { %v149_v24 = vpop.xlane.xlu1 %148  ;;  %v161_v27 = vpop.xlane.xlu0 %160 }
 0x11a   :  { %v190_v28 = vadd.f32 %v189_v25, %v149_v24  ;;  %v167_v33 = vpop.xlane.xlu2 %166 }
 0x121   :  { %v152_v29 = vpop.xlane.xlu1 %151  ;;  %v170_v35 = vpop.xlane.xlu0 %169 }
 0x122   :  { %v191_v30 = vadd.f32 %v190_v28, %v152_v29 }
 0x124   :  { %v192_v31 = vadd.f32 %v191_v30, %v155_v22 }
 0x126   :  { %v193_v32 = vadd.f32 %v192_v31, %v158_v26 }
 0x128   :  { %v194_v34 = vadd.f32 %v193_v32, %v161_v27  ;;  %v176_v40 = vpop.xlane.xlu2 %175 }
 0x129   :  { %v164_v36 = vpop.xlane.xlu1 %163  ;;  %v179_v43 = vpop.xlane.xlu0 %178 }
 0x12a   :  { %v195_v37 = vadd.f32 %v194_v34, %v164_v36 }
 0x12c   :  { %v196_v38 = vadd.f32 %v195_v37, %v167_v33 }
 0x12e   :  { %v197_v39 = vadd.f32 %v196_v38, %v170_v35 }
 0x130   :  { %v185_v48 = vpop.xlane.xlu2 %184 }
 0x131   :  { %v173_v41 = vpop.xlane.xlu1 %172  ;;  %v188_v49 = vpop.xlane.xlu0 %187 }
 0x132   :  { %v198_v42 = vadd.f32 %v197_v39, %v173_v41 }
 0x134   :  { %v199_v44 = vadd.f32 %v198_v42, %v176_v40 }
 0x136   :  { %v200_v45 = vadd.f32 %v199_v44, %v179_v43 }
 0x139   :  { %v182_v46 = vpop.xlane.xlu1 %181 }
 0x13a   :  { %v201_v47 = vadd.f32 %v200_v45, %v182_v46 }
 0x13c   :  { %v202_v50 = vadd.f32 %v201_v47, %v185_v48 }
 0x13e   :  { %v203_v51 = vadd.f32 %v202_v50, %v188_v49 }
 0x140   :  { %v204_v52 = vrot.slane %v203_v51, 4 }
 0x142   :  { %v205_v53 = vadd.f32 %v204_v52, %v203_v51 }
 0x144   :  { %v206_v54 = vrot.slane %v205_v53, 2 }
 0x146   :  { %v207_v55 = vadd.f32 %v206_v54, %v205_v53 }
 0x148   :  { %v208_v56 = vrot.slane %v207_v55, 1 }
 0x14a   :  { %v209_v57 = vadd.f32 %v208_v56, %v207_v55 }
 0x14c   :  { %211 = vst [vmem:[%s385_s3] sm:$0xff] %v209_v57 }

</bundles_post_ra>
